<compile_context>
chip_gen: v7x
topology: tpu7x:2x2x1
jax: 0.10.0
libtpu: 0.0.40
codegen_flags: <defaults>
</compile_context>

<pallas_src>
import functools

import jax
import jax.numpy as jnp
from jax import lax
from jax.experimental import pallas as pl
from jax.experimental.pallas import tpu as pltpu


def _round_up(n, m):
    return ((n + m - 1) // m) * m


def _tpu_generation_info():
    """Returns (vmem_budget_bytes, tensorcores_per_chip), conservatively."""
    physical_vmem = 64 * 1024 * 1024          # v7x-safe fallback
    cores = 1
    try:
        physical_vmem = int(pltpu.get_tpu_info().vmem_capacity_bytes)
    except Exception:
        pass
    try:
        kind = jax.devices()[0].device_kind.lower()
        if "v7" in kind:                      # v7x: 2 TensorCores per chip
            cores = 2
    except Exception:
        pass
    # ~96 MiB usable on v5e/v6e (128 MiB physical), ~48 MiB on v7x (64 MiB).
    budget = max(32 * 1024 * 1024,
                 min(physical_vmem * 3 // 4, 100 * 1024 * 1024))
    return budget, cores


def _cac_loss_kernel(x_ref, label_ref, c_ref, cnorm_ref, out_ref, *, batch):
    C = c_ref.shape[0]
    TB = x_ref.shape[0]

    # ---- MXU work -------------------------------------------------------
    # Cross term c @ x^T without materializing a transpose: contract the
    # feature dim of both operands.  Result layout (C, TB): classes on
    # sublanes, batch tile on the 128-wide lane axis.
    dn = (((1,), (1,)), ((), ()))
    xct = lax.dot_general(c_ref[...], x_ref[...], dn,
                          preferred_element_type=jnp.float32)      # (C, TB)

    xf = x_ref[...].astype(jnp.float32)
    # ||x||^2 as (1, TB) via a tiny MXU reduction (avoids a sublane->lane
    # relayout of a (TB,) vector).
    ones_d = jnp.ones((1, xf.shape[1]), jnp.float32)
    x_norm = lax.dot_general(ones_d, xf * xf, dn,
                             preferred_element_type=jnp.float32)   # (1, TB)

    c_norm = cnorm_ref[...]            # (C, 1), precomputed in the wrapper

    # ---- VPU / EUP work (all f32) ----------------------------------------
    d2 = jnp.maximum(c_norm + x_norm - 2.0 * xct, 0.0)             # (C, TB)
    dists = jnp.sqrt(d2)                                            # (C, TB)

    # anchor = gather(dists, label) via where-select + sublane reduce.
    # NOTE: out-of-range labels silently contribute 0 (torch.gather raises).
    row = lax.broadcasted_iota(jnp.int32, (C, TB), 0)
    anchor = jnp.sum(jnp.where(row == label_ref[...], dists, 0.0),
                     axis=0, keepdims=True)                         # (1, TB)

    # tuplet = log(sum_k exp(anchor - d_k))
    #        = anchor - m + log(sum_k exp(m - d_k)),   m = min_k d_k
    dmin = jnp.min(dists, axis=0, keepdims=True)                    # (1, TB)
    lse = jnp.log(jnp.sum(jnp.exp(dmin - dists), axis=0, keepdims=True))
    tuplet = anchor - dmin + lse                                    # (1, TB)

    # ---- per-tile partial sums (ragged tail masked with selects) ----------
    base = pl.program_id(0) * TB
    col = base + lax.broadcasted_iota(jnp.int32, (1, TB), 1)
    valid = col < batch                                             # (1, TB)

    pa = jnp.sum(jnp.where(valid, anchor, 0.0), axis=1, keepdims=True)  # (1,1)
    pt = jnp.sum(jnp.where(valid, tuplet, 0.0), axis=1, keepdims=True)  # (1,1)

    # Single fused output block: row 0 = anchor partial, row 1 = tuplet.
    sel = lax.broadcasted_iota(jnp.int32, (2, 128), 0) == 0
    out_ref[0] = jnp.where(sel, pa, pt)


def cac_loss(x, label, centres, anchor_scale=0.1):
    """Returns (loss, anchor_mean) exactly like CACLoss.forward."""
    B, D = x.shape
    C, Dc = centres.shape
    assert Dc == D

    itemsize = jnp.dtype(x.dtype).itemsize
    budget, cores = _tpu_generation_info()

    # Per-tile VMEM cost model: resident centres (+ norms, double-buffered
    # conservatively), double-buffered x / label tiles, ~5 live (C, TB) f32
    # intermediates and a handful of (1, TB) f32 vectors.
    resident = 2 * (C * D * itemsize + C * 4)
    per_col = 2 * D * itemsize + 2 * 4 + 5 * C * 4 + 8 * 4
    tb_cap = max(128, ((budget - resident) // per_col) // 128 * 128)

    # Batch tile: lane-multiple, as big as the VMEM budget allows (capped at
    # 8192 rows) so per-step overhead and DMA descriptor costs amortize.
    TB = int(min(tb_cap, 8192, _round_up(B, 128)))
    if cores > 1:
        # Give every TensorCore at least one tile when the batch allows it.
        TB = int(min(TB, max(128, _round_up(pl.cdiv(B, cores), 128))))
    num_tiles = int(pl.cdiv(B, TB))

    label2d = label.astype(jnp.int32).reshape(1, B)

    # Hoisted per-call constants: MXU operands keep the input dtype, centre
    # squared norms are computed once (not per tile).
    c_mx = centres.astype(x.dtype)
    c_norm = jnp.sum(centres.astype(jnp.float32) ** 2, axis=1, keepdims=True)

    kernel = functools.partial(_cac_loss_kernel, batch=B)

    cost = pl.CostEstimate(
        flops=int(2 * B * C * D + 2 * B * D + 8 * B * C),
        transcendentals=int(2 * B * C + 2 * B),
        bytes_accessed=int(B * D * itemsize + B * 4
                           + C * D * itemsize + C * 4
                           + num_tiles * 2 * 128 * 4),
    )

    if cores > 1 and num_tiles >= cores:
        # v7x: real core-level sharding of the (independent) batch axis.
        dims = (getattr(pltpu, "CORE_PARALLEL", pltpu.PARALLEL),)
    else:
        dims = (pltpu.PARALLEL,)

    partials = pl.pallas_call(
        kernel,
        out_shape=jax.ShapeDtypeStruct((num_tiles, 2, 128), jnp.float32),
        grid=(num_tiles,),
        in_specs=[
            pl.BlockSpec((TB, D), lambda i: (i, 0)),    # x batch tile
            pl.BlockSpec((1, TB), lambda i: (0, i)),    # labels on lane axis
            pl.BlockSpec((C, D), lambda i: (0, 0)),     # centres (resident)
            pl.BlockSpec((C, 1), lambda i: (0, 0)),     # ||c||^2 (resident)
        ],
        out_specs=pl.BlockSpec((1, 2, 128), lambda i: (i, 0, 0)),
        compiler_params=pltpu.CompilerParams(
            dimension_semantics=dims,
            vmem_limit_bytes=int(budget)),
        cost_estimate=cost,
    )(x, label2d, c_mx, c_norm)

    sums = jnp.sum(partials[:, :, 0], axis=0)           # (2,)
    anchor_mean = sums[0] / B
    tuplet_mean = sums[1] / B
    loss = tuplet_mean + anchor_scale * anchor_mean
    return loss, anchor_mean


def _cac_loss_ref(x, label, centres, anchor_scale=0.1):
    """Pure-JAX reference mirroring the PyTorch forward."""
    x = x.astype(jnp.float32)
    c = centres.astype(jnp.float32)
    x_norm = jnp.sum(x * x, axis=1, keepdims=True)
    c_norm = jnp.sum(c * c, axis=1)[None, :]
    d2 = jnp.maximum(x_norm + c_norm - 2.0 * x @ c.T, 0.0)
    dists = jnp.sqrt(d2)
    anchor = jnp.take_along_axis(dists, label.reshape(-1, 1), axis=1)
    tuplet = jnp.log(jnp.sum(jnp.exp(anchor - dists), axis=1))
    loss = jnp.mean(tuplet) + anchor_scale * jnp.mean(anchor)
    return loss, jnp.mean(anchor)


if __name__ == "__main__":
    num_classes = 16
    batch = 8
    magnitude = 10.0
    anchor_scale = 0.1

    # Deterministic parameters (module __init__): class anchors.
    centres = magnitude * jnp.eye(num_classes, dtype=jnp.float32)

    # Deterministic example inputs.
    key = jax.random.PRNGKey(0)
    kx, kl = jax.random.split(key)
    x = jax.random.normal(kx, (batch, num_classes), dtype=jnp.float32)
    label = jax.random.randint(kl, (batch,), 0, num_classes, dtype=jnp.int32)

    loss, anchor_mean = cac_loss(x, label, centres, anchor_scale)
    jax.block_until_ready((loss, anchor_mean))

    ref_loss, ref_anchor = _cac_loss_ref(x, label, centres, anchor_scale)
    assert jnp.allclose(loss, ref_loss, rtol=1e-4, atol=1e-5), (loss, ref_loss)
    assert jnp.allclose(anchor_mean, ref_anchor, rtol=1e-4, atol=1e-5), (
        anchor_mean, ref_anchor)

    print("KERNEL_OK")
</pallas_src>

<mosaic_0001>
module attributes {stable_mosaic.version = 11 : i64} {
  func.func @_cac_loss_kernel(%arg0: i32, %arg1: memref<128x16xf32, #tpu.memory_space<vmem>>, %arg2: memref<1x128xi32, #tpu.memory_space<vmem>>, %arg3: memref<16x16xf32, #tpu.memory_space<vmem>>, %arg4: memref<16x1xf32, #tpu.memory_space<vmem>>, %arg5: memref<1x2x128xf32, #tpu.memory_space<vmem>>) attributes {dimension_semantics = [#tpu.dimension_semantics<parallel>], iteration_bounds = array<i64: 1>, scalar_prefetch = 0 : i64, scratch_operands = 0 : i64, tpu.core_type = #tpu.core_type<tc>, window_params = [{transform_indices = @transform_0, window_bounds = array<i64: 128, 16>}, {transform_indices = @transform_1, window_bounds = array<i64: 1, 128>}, {pipeline_mode = #tpu.pipeline_mode<synchronous>, transform_indices = @transform_2, window_bounds = array<i64: 16, 16>}, {pipeline_mode = #tpu.pipeline_mode<synchronous>, transform_indices = @transform_3, window_bounds = array<i64: 16, 1>}, {transform_indices = @transform_4, window_bounds = array<i64: 1, 2, 128>}]} {
    %c0 = arith.constant 0 : index
    %c0_0 = arith.constant 0 : index
    %0 = vector.load %arg3[%c0, %c0_0] : memref<16x16xf32, #tpu.memory_space<vmem>>, vector<16x16xf32>
    %c0_1 = arith.constant 0 : index
    %c0_2 = arith.constant 0 : index
    %1 = vector.load %arg1[%c0_1, %c0_2] : memref<128x16xf32, #tpu.memory_space<vmem>>, vector<128x16xf32>
    %cst = arith.constant dense<0.000000e+00> : vector<16x128xf32>
    %2 = tpu.matmul %0, %1, %cst {dimension_numbers = #tpu.dot_dimension_numbers<[1], [1], [0], [0], [0, 0, 1, 0], [], []>} : vector<16x16xf32>, vector<128x16xf32>, vector<16x128xf32> -> vector<16x128xf32>
    %c0_3 = arith.constant 0 : index
    %c0_4 = arith.constant 0 : index
    %3 = vector.load %arg1[%c0_3, %c0_4] : memref<128x16xf32, #tpu.memory_space<vmem>>, vector<128x16xf32>
    %cst_5 = arith.constant 1.000000e+00 : f32
    %4 = vector.broadcast %cst_5 : f32 to vector<1x16xf32>
    %5 = arith.mulf %3, %3 : vector<128x16xf32>
    %cst_6 = arith.constant dense<0.000000e+00> : vector<1x128xf32>
    %6 = tpu.matmul %4, %5, %cst_6 {dimension_numbers = #tpu.dot_dimension_numbers<[1], [1], [0], [0], [0, 0, 1, 0], [], []>} : vector<1x16xf32>, vector<128x16xf32>, vector<1x128xf32> -> vector<1x128xf32>
    %c0_7 = arith.constant 0 : index
    %c0_8 = arith.constant 0 : index
    %7 = vector.load %arg4[%c0_7, %c0_8] : memref<16x1xf32, #tpu.memory_space<vmem>>, vector<16x1xf32>
    %8 = vector.broadcast %7 : vector<16x1xf32> to vector<16x128xf32>
    %9 = vector.broadcast %6 : vector<1x128xf32> to vector<16x128xf32>
    %10 = arith.addf %8, %9 : vector<16x128xf32>
    %cst_9 = arith.constant 2.000000e+00 : f32
    %11 = vector.broadcast %cst_9 : f32 to vector<16x128xf32>
    %12 = arith.mulf %11, %2 : vector<16x128xf32>
    %13 = arith.subf %10, %12 : vector<16x128xf32>
    %cst_10 = arith.constant 0.000000e+00 : f32
    %14 = vector.broadcast %cst_10 : f32 to vector<16x128xf32>
    %15 = arith.maximumf %13, %14 : vector<16x128xf32>
    %16 = math.sqrt %15 : vector<16x128xf32>
    %17 = tpu.iota {dimensions = array<i32: 0>} : vector<16x128xi32>
    %c0_11 = arith.constant 0 : index
    %c0_12 = arith.constant 0 : index
    %18 = vector.load %arg2[%c0_11, %c0_12] : memref<1x128xi32, #tpu.memory_space<vmem>>, vector<1x128xi32>
    %19 = vector.broadcast %18 : vector<1x128xi32> to vector<16x128xi32>
    %20 = arith.cmpi eq, %17, %19 : vector<16x128xi32>
    %cst_13 = arith.constant 0.000000e+00 : f32
    %21 = vector.broadcast %cst_13 : f32 to vector<16x128xf32>
    %22 = arith.select %20, %16, %21 : vector<16x128xi1>, vector<16x128xf32>
    %cst_14 = arith.constant dense<0.000000e+00> : vector<128xf32>
    %23 = vector.multi_reduction <add>, %22, %cst_14 [0] : vector<16x128xf32> to vector<128xf32>
    %24 = vector.shape_cast %23 : vector<128xf32> to vector<1x128xf32>
    %cst_15 = arith.constant dense<0x7F800000> : vector<128xf32>
    %25 = vector.multi_reduction <minimumf>, %16, %cst_15 [0] : vector<16x128xf32> to vector<128xf32>
    %26 = vector.shape_cast %25 : vector<128xf32> to vector<1x128xf32>
    %27 = vector.broadcast %26 : vector<1x128xf32> to vector<16x128xf32>
    %28 = arith.subf %27, %16 : vector<16x128xf32>
    %29 = math.exp %28 : vector<16x128xf32>
    %cst_16 = arith.constant dense<0.000000e+00> : vector<128xf32>
    %30 = vector.multi_reduction <add>, %29, %cst_16 [0] : vector<16x128xf32> to vector<128xf32>
    %31 = vector.shape_cast %30 : vector<128xf32> to vector<1x128xf32>
    %32 = math.log %31 : vector<1x128xf32>
    %33 = arith.subf %24, %26 : vector<1x128xf32>
    %34 = arith.addf %33, %32 : vector<1x128xf32>
    %c128_i32 = arith.constant 128 : i32
    %35 = arith.muli %arg0, %c128_i32 : i32
    %36 = tpu.iota {dimensions = array<i32: 1>} : vector<1x128xi32>
    %37 = vector.broadcast %35 : i32 to vector<1x128xi32>
    %38 = arith.addi %37, %36 : vector<1x128xi32>
    %c8_i32 = arith.constant 8 : i32
    %39 = vector.broadcast %c8_i32 : i32 to vector<1x128xi32>
    %40 = arith.cmpi slt, %38, %39 : vector<1x128xi32>
    %cst_17 = arith.constant 0.000000e+00 : f32
    %41 = vector.broadcast %cst_17 : f32 to vector<1x128xf32>
    %42 = arith.select %40, %24, %41 : vector<1x128xi1>, vector<1x128xf32>
    %cst_18 = arith.constant dense<0.000000e+00> : vector<1xf32>
    %43 = vector.multi_reduction <add>, %42, %cst_18 [1] : vector<1x128xf32> to vector<1xf32>
    %44 = vector.shape_cast %43 : vector<1xf32> to vector<1x1xf32>
    %cst_19 = arith.constant 0.000000e+00 : f32
    %45 = vector.broadcast %cst_19 : f32 to vector<1x128xf32>
    %46 = arith.select %40, %34, %45 : vector<1x128xi1>, vector<1x128xf32>
    %cst_20 = arith.constant dense<0.000000e+00> : vector<1xf32>
    %47 = vector.multi_reduction <add>, %46, %cst_20 [1] : vector<1x128xf32> to vector<1xf32>
    %48 = vector.shape_cast %47 : vector<1xf32> to vector<1x1xf32>
    %49 = tpu.iota {dimensions = array<i32: 0>} : vector<2x128xi32>
    %c0_i32 = arith.constant 0 : i32
    %50 = vector.broadcast %c0_i32 : i32 to vector<2x128xi32>
    %51 = arith.cmpi eq, %49, %50 : vector<2x128xi32>
    %52 = vector.shape_cast %44 : vector<1x1xf32> to vector<1x1xf32>
    %53 = vector.broadcast %52 : vector<1x1xf32> to vector<2x128xf32>
    %54 = vector.shape_cast %48 : vector<1x1xf32> to vector<1x1xf32>
    %55 = vector.broadcast %54 : vector<1x1xf32> to vector<2x128xf32>
    %56 = arith.select %51, %53, %55 : vector<2x128xi1>, vector<2x128xf32>
    %c0_21 = arith.constant 0 : index
    %c0_22 = arith.constant 0 : index
    %c0_23 = arith.constant 0 : index
    %57 = vector.load %arg5[%c0_21, %c0_22, %c0_23] : memref<1x2x128xf32, #tpu.memory_space<vmem>>, vector<1x2x128xf32>
    %58 = vector.shape_cast %57 : vector<1x2x128xf32> to vector<2x128xf32>
    %59 = vector.shape_cast %56 : vector<2x128xf32> to vector<1x2x128xf32>
    tpu.vector_store %arg5[%c0_21, %c0_22, %c0_23], %59 {strides = array<i32>} : memref<1x2x128xf32, #tpu.memory_space<vmem>>, vector<1x2x128xf32>,
    return
  }
  func.func @transform_0(%arg0: i32) -> (i32, i32) {
    %c0_i32 = arith.constant 0 : i32
    %c0_i32_0 = arith.constant 0 : i32
    return %arg0, %c0_i32 : i32, i32
  }
  func.func @transform_1(%arg0: i32) -> (i32, i32) {
    %c0_i32 = arith.constant 0 : i32
    %c0_i32_0 = arith.constant 0 : i32
    return %c0_i32, %arg0 : i32, i32
  }
  func.func @transform_2(%arg0: i32) -> (i32, i32) {
    %c0_i32 = arith.constant 0 : i32
    %c0_i32_0 = arith.constant 0 : i32
    %c0_i32_1 = arith.constant 0 : i32
    return %c0_i32, %c0_i32_0 : i32, i32
  }
  func.func @transform_3(%arg0: i32) -> (i32, i32) {
    %c0_i32 = arith.constant 0 : i32
    %c0_i32_0 = arith.constant 0 : i32
    %c0_i32_1 = arith.constant 0 : i32
    return %c0_i32, %c0_i32_0 : i32, i32
  }
  func.func @transform_4(%arg0: i32) -> (i32, i32, i32) {
    %c0_i32 = arith.constant 0 : i32
    %c0_i32_0 = arith.constant 0 : i32
    %c0_i32_1 = arith.constant 0 : i32
    return %arg0, %c0_i32, %c0_i32_0 : i32, i32, i32
  }
}

</mosaic_0001>

<bundles_post_ra>
// kernel: tpu_custom_call.1
= control target key start
LH: loop header
LB: loop body
LE: loop exit
PB: predicated region body
PF: predicated region fallthrough
CT: control target
= control target key end

     0   :  { %9 = vsyncpa [#allocation3], 0  ;;  %s902_s0 = inlined_call_operand.vmem [shape: f32[8,16], index: 0, kind: input, shape index: {}]   ;;  %s903_s1 = inlined_call_operand.hbm [shape: s32[1,8], index: 1, kind: input, shape index: {}]   ;;  %s904_s2 = inlined_call_operand.vmem [shape: f32[16,16], index: 2, kind: input, shape index: {}]   ;;  %s905_s3 = inlined_call_operand.vmem [shape: f32[16,1], index: 3, kind: input, shape index: {}]   ;;  %s906_s4 = inlined_call_operand.hbm [shape: f32[1,2,128], index: 4, kind: output, shape index: {}]  }
   0x1   :  { %10 = vsyncpa [#allocation4], 0  ;;  %s713_s15 = smov [#allocation2]   ;;  %s665_s19 = scalar_lea.hbm %s903_s1, 16 }
   0x2   :  { %s19_s16 = sshll.u32 %s713_s15, 4  ;;  %p666_p0 = scmp.ne.s32.totalorder %s903_s1, %s665_s19  ;;  %s20_s16 = int_to_ptr.vmem [resolvable:$true] %s19_s16 }
   0x3   :  { %p669_p1 = scmp.lt.u32.totalorder %s665_s19, %s903_s1 }
   0x5   :  { %p671_p2 = pnand %p669_p1, %p666_p0 }
   0x7   :  { %674 = shalt.err (!%p671_p2)
}
   0x8   :  { %s675_s24 = scalar_lea.vmem %s20_s16, 16  ;;  %s679_s25 = scalar_lea.vmem %s20_s16, 32 }
   0x9   :  { %p676_p3 = scmp.ne.s32.totalorder %s20_s16, %s675_s24  ;;  %p680_p4 = scmp.lt.s32.totalorder %s20_s16, %s20_s16 }
   0xa   :  { %p681_p5 = scmp.lt.s32.totalorder %s679_s25, %s675_s24 }
   0xc   :  { %p682_p6 = por %p681_p5, %p680_p4 }
   0xe   :  { %p683_p7 = pnand %p682_p6, %p676_p3 }
  0x10   :  { %686 = shalt.err (!%p683_p7)
}
  0x11   :  { %22 = dma.hbm_to_vmem [thread:$0]  %s903_s1, 16, %s20_s16, [#allocation3]  }
  0x12   :  { %709 = dma.done.wait [#allocation3], 16  }
  0x13   :  { %710 = vsyncadd [#allocation3], 4294967280  ;;  %v714_v0 = vmov 0.0|0.0   ;;  %vm715_vm0 = vmmov 0   ;;  %v716_v1 = vmov 0.0   ;;  %v717_v2 = vmov 0  }
  0x14   :  { %615 = vmatprep.subr.bf16.mxu1 %v714_v0  ;;  %564 = vmatprep.mubr.msk.f32.mxu1 %vm715_vm0, %v716_v1  ;;  %vm48_vm1 = vcmask 130048   ;;  %v32_v4 = vld [vmem:[%s902_s0] sm:$0xff]  ;;  %v33_v5 = vld [vmem:[%s902_s0 + $0x8] sm:$0xff]  ;;  %v34_v6 = vld [vmem:[%s902_s0 + $0x10] sm:$0xff]  ;;  %v718_v56 = vmov 1.0   ;;  %v327_v57 = vlaneseq }
  0x15   :  { %654 = vset.pattern.permute.xlu0 %v717_v2  ;;  %vm760_vm2 = vmpackc.low %vm48_vm1, %vm48_vm1  ;;  %v567_v7 = vpack.c.bf16 %v33_v5, %v32_v4  ;;  %v178_v8 = vmul.f32 %v32_v4, %v32_v4  ;;  %v179_v9 = vmul.f32 %v33_v5, %v33_v5  ;;  %v35_v10 = vld [vmem:[%s902_s0 + $0x18] sm:$0xff]  ;;  %v180_v13 = vmul.f32 %v34_v6, %v34_v6  ;;  %v30_v15 = vld [vmem:[%s904_s2] sm:$0xff] }
  0x16   :  { %v573_v11 = vpack.c.bf16 %v35_v10, %v34_v6  ;;  %v181_v14 = vmul.f32 %v35_v10, %v35_v10  ;;  %v36_v16 = vld [vmem:[%s902_s0 + $0x20] sm:$0xff]  ;;  %v37_v17 = vld [vmem:[%s902_s0 + $0x28] sm:$0xff]  ;;  %529 = vmatprep.mubr.msk.f32.mxu0 %vm48_vm1, %v30_v15  ;;  %v38_v24 = vld [vmem:[%s902_s0 + $0x30] sm:$0xff]  ;;  %v882_v58 = vshrl.u32 %v327_v57, 7 }
  0x17   :  { %569 = vmatprep.subr.msk.bf16.mxu0 %vm760_vm2, %v567_v7  ;;  %v616_v12 = vpack.c.bf16 %v179_v9, %v178_v8  ;;  %v315_v18 = vld [vmem:[%s905_s3] sm:$0xff]  ;;  %v579_v20 = vpack.c.bf16 %v37_v17, %v36_v16  ;;  %v316_v21 = vld [vmem:[%s905_s3 + $0x8] sm:$0xff]  ;;  %v182_v22 = vmul.f32 %v36_v16, %v36_v16  ;;  %v183_v23 = vmul.f32 %v37_v17, %v37_v17  ;;  %v39_v25 = vld [vmem:[%s902_s0 + $0x38] sm:$0xff] }
  0x18   :  { %572 = vmatpush3.bf16.xpose.msk.msra.mxu0 %vm760_vm2, %v567_v7  ;;  %319 = vperm.xlu0 %654, %v315_v18   ;;  %v620_v19 = vpack.c.bf16 %v181_v14, %v180_v13  ;;  %v585_v27 = vpack.c.bf16 %v39_v25, %v38_v24  ;;  %v184_v28 = vmul.f32 %v38_v24, %v38_v24  ;;  %v40_v30 = vld [vmem:[%s902_s0 + $0x40] sm:$0xff]  ;;  %v41_v31 = vld [vmem:[%s902_s0 + $0x48] sm:$0xff]  ;;  %v42_v36 = vld [vmem:[%s902_s0 + $0x50] sm:$0xff]  ;;  %v329_v60 = vsub.s32 0, %v882_v58 }
  0x19   :  { %618 = vmatpush3.bf16.xpose.msk.msra.mxu1 %vm760_vm2, %v616_v12  ;;  %575 = vmatprep.subr.msk.bf16.mxu0 %vm760_vm2, %v573_v11  ;;  %v624_v26 = vpack.c.bf16 %v183_v23, %v182_v22  ;;  %v185_v29 = vmul.f32 %v39_v25, %v39_v25  ;;  %v591_v33 = vpack.c.bf16 %v41_v31, %v40_v30  ;;  %v43_v37 = vld [vmem:[%s902_s0 + $0x58] sm:$0xff]  ;;  %v44_v42 = vld [vmem:[%s902_s0 + $0x60] sm:$0xff]  ;;  %v45_v43 = vld [vmem:[%s902_s0 + $0x68] sm:$0xff]  ;;  %vm408_vm10 = vcmp.eq.s32.totalorder %v882_v58, 0 }
  0x1a   :  { %619 = vmatprep.subr.bf16.mxu1 %v714_v0  ;;  %v186_v34 = vmul.f32 %v40_v30, %v40_v30  ;;  %v187_v35 = vmul.f32 %v41_v31, %v41_v31  ;;  %v597_v39 = vpack.c.bf16 %v43_v37, %v42_v36  ;;  %v188_v40 = vmul.f32 %v42_v36, %v42_v36  ;;  %v46_v48 = vld [vmem:[%s902_s0 + $0x70] sm:$0xff]  ;;  %v47_v49 = vld [vmem:[%s902_s0 + $0x78] sm:$0xff]  ;;  %v31_v55 = vld [vmem:[%s904_s2 + $0x8] sm:$0xff]  ;;  %s719_s2 = smov [#allocation5]  }
  0x1b   :  { %v628_v32 = vpack.c.bf16 %v185_v29, %v184_v28  ;;  %v189_v41 = vmul.f32 %v43_v37, %v43_v37  ;;  %v603_v45 = vpack.c.bf16 %v45_v43, %v44_v42  ;;  %v190_v46 = vmul.f32 %v44_v42, %v44_v42  ;;  %v461_v12 = vld [vmem:[#allocation2] ss:$0 sm:$0xff]  ;;  %s417_s12 = sshll.u32 %s719_s2, 4  ;;  %s418_s12 = int_to_ptr.vmem [resolvable:$true] %s417_s12 }
  0x1c   :  { %324 = vperm.xlu0 %654, %v316_v21   ;;  %v632_v38 = vpack.c.bf16 %v187_v35, %v186_v34  ;;  %v191_v47 = vmul.f32 %v45_v43, %v45_v43  ;;  %v609_v51 = vpack.c.bf16 %v47_v49, %v46_v48  ;;  %v192_v52 = vmul.f32 %v46_v48, %v46_v48  ;;  %s687_s13 = scalar_lea.vmem %s418_s12, 32  ;;  %p692_p9 = scmp.lt.s32.totalorder %s418_s12, %s418_s12 }
  0x1d   :  { %v636_v44 = vpack.c.bf16 %v189_v41, %v188_v40  ;;  %v193_v53 = vmul.f32 %v47_v49, %v47_v49  ;;  %vm361_vm3 = vcmp.eq.s32.totalorder %v882_v58, %v461_v12  ;;  %v398_v34 = vand.u32 127, %v327_v57  ;;  %p688_p8 = scmp.ne.s32.totalorder %s418_s12, %s687_s13  ;;  %p693_p10 = scmp.lt.s32.totalorder %s687_s13, %s687_s13 }
  0x1e   :  { %v640_v50 = vpack.c.bf16 %v191_v47, %v190_v46 }
  0x1f   :  { %v644_v54 = vpack.c.bf16 %v193_v53, %v192_v52  ;;  %vm401_vm9 = vcmp.lt.s32.totalorder %v398_v34, 8  ;;  %p694_p11 = por %p693_p10, %p692_p9 }
  0x20   :  { %578 = vmatpush3.bf16.xpose.msk.msra.mxu0 %vm760_vm2, %v573_v11  ;;  %v355_v11 = vadd.s32 8, %v882_v58 }
  0x21   :  { %622 = vmatpush3.bf16.xpose.msk.msra.mxu1 %vm760_vm2, %v620_v19  ;;  %581 = vmatprep.subr.msk.bf16.mxu0 %vm760_vm2, %v579_v20  ;;  %p695_p12 = pnand %p694_p11, %p688_p8 }
  0x22   :  { %623 = vmatprep.subr.bf16.mxu1 %v714_v0  ;;  %vm362_vm5 = vcmp.eq.s32.totalorder %v355_v11, %v461_v12 }
  0x28   :  { %584 = vmatpush3.bf16.xpose.msk.msra.mxu0 %vm760_vm2, %v579_v20 }
  0x29   :  { %626 = vmatpush3.bf16.xpose.msk.msra.mxu1 %vm760_vm2, %v624_v26  ;;  %587 = vmatprep.subr.msk.bf16.mxu0 %vm760_vm2, %v585_v27 }
  0x2a   :  { %627 = vmatprep.subr.bf16.mxu1 %v714_v0 }
  0x30   :  { %590 = vmatpush3.bf16.xpose.msk.msra.mxu0 %vm760_vm2, %v585_v27 }
  0x31   :  { %630 = vmatpush3.bf16.xpose.msk.msra.mxu1 %vm760_vm2, %v628_v32  ;;  %593 = vmatprep.subr.msk.bf16.mxu0 %vm760_vm2, %v591_v33 }
  0x32   :  { %631 = vmatprep.subr.bf16.mxu1 %v714_v0 }
  0x38   :  { %596 = vmatpush3.bf16.xpose.msk.msra.mxu0 %vm760_vm2, %v591_v33 }
  0x39   :  { %634 = vmatpush3.bf16.xpose.msk.msra.mxu1 %vm760_vm2, %v632_v38  ;;  %599 = vmatprep.subr.msk.bf16.mxu0 %vm760_vm2, %v597_v39 }
  0x3a   :  { %635 = vmatprep.subr.bf16.mxu1 %v714_v0 }
  0x40   :  { %602 = vmatpush3.bf16.xpose.msk.msra.mxu0 %vm760_vm2, %v597_v39 }
  0x41   :  { %638 = vmatpush3.bf16.xpose.msk.msra.mxu1 %vm760_vm2, %v636_v44  ;;  %605 = vmatprep.subr.msk.bf16.mxu0 %vm760_vm2, %v603_v45 }
  0x42   :  { %639 = vmatprep.subr.bf16.mxu1 %v714_v0 }
  0x48   :  { %608 = vmatpush3.bf16.xpose.msk.msra.mxu0 %vm760_vm2, %v603_v45 }
  0x49   :  { %642 = vmatpush3.bf16.xpose.msk.msra.mxu1 %vm760_vm2, %v640_v50  ;;  %611 = vmatprep.subr.msk.bf16.mxu0 %vm760_vm2, %v609_v51 }
  0x4a   :  { %643 = vmatprep.subr.bf16.mxu1 %v714_v0 }
  0x50   :  { %614 = vmatpush3.bf16.xpose.msk.msra.mxu0 %vm760_vm2, %v609_v51 }
  0x51   :  { %646 = vmatpush3.bf16.xpose.msk.msra.mxu1 %vm760_vm2, %v644_v54 }
  0x57   :  { %530 = vmatmul.mubr.msk.f32.vlgmr.msra.gmra.mrb[0].mxu0 %vm48_vm1, %v31_v55 }
  0x58   :  { %565 = vmatmul.mubr.msk.f32.vlgmr.msra.gmra.mrb[0].mxu1 %vm48_vm1, %v718_v56 }
  0x97   :  { %v320_v59 = vpop.permute.xlu0 %319 }
  0x9b   :  { %v325_v4 = vpop.permute.xlu0 %324 }
 0x12a   :  { %v531_v61 = vpop.f32.mrb[0].mxu0 }
 0x12b   :  { %v311_v62 = vpop.f32.mrb[0].mxu1  ;;  %v169_v63 = vpop.f32.mrb[1].mxu0  ;;  %v334_v0 = vmul.f32 2.0, %v531_v61 }
 0x12c   :  { %v330_v1 = vrot.slane %v311_v62, %v329_v60  ;;  %v333_v2 = vmul.f32 2.0, %v169_v63  ;;  %v566_v3 = vpop.f32.mrb[1].mxu1 }
 0x12e   :  { %v331_v5 = vadd.f32 %v330_v1, %v320_v59  ;;  %v332_v6 = vadd.f32 %v330_v1, %v325_v4 }
 0x130   :  { %v336_v7 = vsub.f32 %v332_v6, %v334_v0  ;;  %v335_v8 = vsub.f32 %v331_v5, %v333_v2 }
 0x132   :  { %v338_v9 = vmax.f32 %v336_v7, 0.0  ;;  %v337_v10 = vmax.f32 %v335_v8, 0.0 }
 0x134   :  { %655 = vrsqrt.f32 %v338_v9  ;;  %vm348_vm4 = vcmp.eq.f32.partialorder %v338_v9, inf  ;;  %v351_v17 = vand.u32 2147483648, %v338_v9  ;;  %vm341_vm6 = vcmp.eq.f32.partialorder %v337_v10, inf }
 0x135   :  { %657 = vrsqrt.f32 %v337_v10  ;;  %v344_v18 = vand.u32 2147483648, %v337_v10  ;;  %vm350_vm7 = vcmp.eq.f32.partialorder %v338_v9, 0.0  ;;  %vm343_vm8 = vcmp.eq.f32.partialorder %v337_v10, 0.0 }
 0x13e   :  { %v656_v13 = vpop.eup %655 }
 0x13f   :  { %v658_v14 = vpop.eup %657  ;;  %v347_v15 = vmul.f32 %v656_v13, %v338_v9 }
 0x140   :  { %v340_v16 = vmul.f32 %v658_v14, %v337_v10 }
 0x141   :  { %v349_v19 = vsel %vm348_vm4, %v338_v9, %v347_v15 }
 0x142   :  { %v342_v20 = vsel %vm341_vm6, %v337_v10, %v340_v16  ;;  %v352_v21 = vsel %vm350_vm7, %v351_v17, %v349_v19 }
 0x143   :  { %v345_v22 = vsel %vm343_vm8, %v344_v18, %v342_v20  ;;  %v364_v23 = vsel %vm362_vm5, %v352_v21, 0.0 }
 0x144   :  { %v363_v24 = vsel %vm361_vm3, %v345_v22, 0.0  ;;  %v372_v25 = vmin.f32 %v345_v22, %v352_v21 }
 0x145   :  { %v365_v26 = vadd.f32 %v364_v23, %v363_v24 }
 0x146   :  { %v373_v27 = vrot.slane %v372_v25, 4 }
 0x147   :  { %v366_v28 = vrot.slane %v365_v26, 4 }
 0x148   :  { %v374_v29 = vmin.f32 %v372_v25, %v373_v27 }
 0x149   :  { %v367_v30 = vadd.f32 %v366_v28, %v365_v26 }
 0x14a   :  { %v375_v31 = vrot.slane %v374_v29, 2 }
 0x14b   :  { %v368_v32 = vrot.slane %v367_v30, 2 }
 0x14c   :  { %v376_v33 = vmin.f32 %v374_v29, %v375_v31 }
 0x14d   :  { %v369_v35 = vadd.f32 %v368_v32, %v367_v30 }
 0x14e   :  { %v377_v36 = vrot.slane %v376_v33, 1 }
 0x14f   :  { %v370_v37 = vrot.slane %v369_v35, 1 }
 0x150   :  { %v378_v38 = vmin.f32 %v376_v33, %v377_v36 }
 0x151   :  { %v371_v39 = vadd.f32 %v370_v37, %v369_v35 }
 0x152   :  { %v379_v40 = vsub.f32 %v378_v38, %v345_v22  ;;  %v380_v41 = vsub.f32 %v378_v38, %v352_v21 }
 0x153   :  { %v402_v42 = vsel %vm401_vm9, %v371_v39, 0.0  ;;  %v394_v43 = vsub.f32 %v371_v39, %v378_v38 }
 0x154   :  { %v381_v44 = vmul.f32 1.442695, %v379_v40  ;;  %v383_v45 = vmul.f32 1.442695, %v380_v41  ;;  %403 = vadd.xlane.f32.xlu1 %v402_v42 }
 0x156   :  { %659 = vpow2.f32 %v381_v44 }
 0x157   :  { %661 = vpow2.f32 %v383_v45 }
 0x160   :  { %v660_v46 = vpop.eup %659 }
 0x161   :  { %v662_v47 = vpop.eup %661 }
 0x162   :  { %v385_v48 = vadd.f32 %v662_v47, %v660_v46 }
 0x164   :  { %v386_v49 = vrot.slane %v385_v48, 4 }
 0x166   :  { %v387_v50 = vadd.f32 %v386_v49, %v385_v48 }
 0x168   :  { %v388_v51 = vrot.slane %v387_v50, 2 }
 0x16a   :  { %v389_v52 = vadd.f32 %v388_v51, %v387_v50 }
 0x16c   :  { %v390_v53 = vrot.slane %v389_v52, 1 }
 0x16e   :  { %v391_v54 = vadd.f32 %v390_v53, %v389_v52 }
 0x170   :  { %663 = vlog2.f32 %v391_v54 }
 0x17a   :  { %v664_v55 = vpop.eup %663 }
 0x17b   :  { %v393_v56 = vmul.f32 0.6931472, %v664_v55 }
 0x17d   :  { %v395_v57 = vadd.f32 %v394_v43, %v393_v56 }
 0x17f   :  { %v405_v59 = vsel %vm401_vm9, %v395_v57, 0.0 }
 0x180   :  { %406 = vadd.xlane.f32.xlu1 %v405_v59 }
 0x1e1   :  { %v404_v60 = vpop.xlane.xlu1 %403 }
 0x20d   :  { %v407_v61 = vpop.xlane.xlu1 %406 }
 0x20e   :  { %v409_v62 = vsel %vm408_vm10, %v404_v60, %v407_v61 }
 0x20f   :  { %410 = vst [vmem:[#allocation5] sm:$0x3] %v409_v62 }
 0x210   :  { %698 = shalt.err (!%p695_p12)
}
 0x211   :  { %s699_s16 = scalar_lea.hbm %s906_s4, 32 }
 0x212   :  { %p700_p13 = scmp.ne.s32.totalorder %s906_s4, %s699_s16  ;;  %p703_p0 = scmp.lt.u32.totalorder %s699_s16, %s906_s4 }
 0x214   :  { %p705_p1 = pnand %p703_p0, %p700_p13 }
 0x216   :  { %708 = shalt.err (!%p705_p1)
}
 0x217   :  { %420 = dma.vmem_to_hbm [thread:$0]  %s418_s12, 32, %s906_s4, [#allocation4]  }
 0x218   :  { %711 = dma.done.wait [#allocation4], 32  }
 0x219   :  { %712 = vsyncadd [#allocation4], 4294967264 }
 0x21a   :  { %424 = vsyncpa [#allocation3], 1 }
 0x21b   :  { %425 = vsyncpa [#allocation4], 1 }

</bundles_post_ra>
